<compile_context>
chip_gen: v6e
topology: v6e:2x2x1
jax: 0.10.0
libtpu: 0.0.40
codegen_flags: <defaults>
</compile_context>

<pallas_src>
import functools

import jax
import jax.numpy as jnp
from jax.experimental import pallas as pl
from jax.experimental.pallas import tpu as pltpu

EPS = 1e-5                    # nn.LayerNorm default eps
NEG_INF = -10000000000.0      # value used by the PyTorch module
LANE = 128

# Row layout of the packed "small vector" parameter slab.
(ROW_FN_W, ROW_FN_B,
 ROW_B1, ROW_LN1_W, ROW_LN1_B,
 ROW_B2, ROW_LN2_W, ROW_LN2_B,
 ROW_BIR, ROW_BIZ, ROW_BIN,
 ROW_BHR, ROW_BHZ, ROW_BHN,
 ROW_NORM_W, ROW_NORM_B, ROW_ACT_B) = range(17)
VROWS = 17
VROWS_PAD = 24                # sublane-aligned (multiple of 8)


def _round_up(n, m):
    return ((n + m - 1) // m) * m


def rmappo_kernel(x_ref, h_ref, mask_ref, avail_ref,
                  vecs_ref, w1_ref, w2_ref, gruw_ref, aw_ref,
                  action_ref, hxs_ref, *, D, H, Dp, Hp, Ap):
    V = vecs_ref[...]                         # (VROWS_PAD, W) float32 slab

    def row(i, width):                        # (1, width) broadcast row
        return V[i:i + 1, :width]

    def layernorm(v, w, b, n):
        # One reduction pass over the TRUE feature count n. Padded lanes of v are
        # exactly zero, so they contribute nothing to either sum; padded lanes of
        # w/b are zero, so the output stays zero on padded lanes.
        inv_n = 1.0 / float(n)
        mu = jnp.sum(v, axis=-1, keepdims=True) * inv_n
        var = jnp.sum(v * v, axis=-1, keepdims=True) * inv_n - mu * mu
        return (v - mu) * jax.lax.rsqrt(var + EPS) * w + b

    bf16 = lambda a: a.astype(jnp.bfloat16)

    # feature_norm
    x = layernorm(x_ref[...], row(ROW_FN_W, Dp), row(ROW_FN_B, Dp), D)

    # fc1: Linear -> ReLU -> LayerNorm
    h1 = jnp.dot(bf16(x), w1_ref[...], preferred_element_type=jnp.float32)
    h1 = layernorm(jnp.maximum(h1 + row(ROW_B1, Hp), 0.0),
                   row(ROW_LN1_W, Hp), row(ROW_LN1_B, Hp), H)

    # fc2: Linear -> ReLU -> LayerNorm
    h2 = jnp.dot(bf16(h1), w2_ref[...], preferred_element_type=jnp.float32)
    h2 = layernorm(jnp.maximum(h2 + row(ROW_B2, Hp), 0.0),
                   row(ROW_LN2_W, Hp), row(ROW_LN2_B, Hp), H)

    # masked initial hidden state: hxs * mask (mask pre-broadcast over hidden dim)
    h0 = h_ref[...] * mask_ref[...]

    # Single-step GRU (PyTorch nn.GRU equations, gate order r, z, n) — fused into
    # two (Hp, 3*Hp) matmuls instead of six (Hp, Hp) ones.
    gi = jnp.dot(bf16(h2), gruw_ref[0], preferred_element_type=jnp.float32)
    gh = jnp.dot(bf16(h0), gruw_ref[1], preferred_element_type=jnp.float32)
    gi_r, gi_z, gi_n = gi[:, 0:Hp], gi[:, Hp:2 * Hp], gi[:, 2 * Hp:3 * Hp]
    gh_r, gh_z, gh_n = gh[:, 0:Hp], gh[:, Hp:2 * Hp], gh[:, 2 * Hp:3 * Hp]
    r = jax.nn.sigmoid(gi_r + row(ROW_BIR, Hp) + gh_r + row(ROW_BHR, Hp))
    z = jax.nn.sigmoid(gi_z + row(ROW_BIZ, Hp) + gh_z + row(ROW_BHZ, Hp))
    n = jnp.tanh(gi_n + row(ROW_BIN, Hp) + r * (gh_n + row(ROW_BHN, Hp)))
    h_new = (1.0 - z) * n + z * h0            # f32 recurrent state update

    # norm + action head
    y = layernorm(h_new, row(ROW_NORM_W, Hp), row(ROW_NORM_B, Hp), H)
    logits = jnp.dot(bf16(y), aw_ref[...], preferred_element_type=jnp.float32)
    logits = logits + row(ROW_ACT_B, Ap)

    # mask unavailable actions (padded action lanes have avail == 0 too), then
    # argmax-one-hot with ties kept, exactly like onehot_from_logits.
    logits = jnp.where(avail_ref[...] == 0.0, NEG_INF, logits)
    mx = jnp.max(logits, axis=-1, keepdims=True)
    action_ref[...] = (logits == mx).astype(jnp.float32)
    hxs_ref[...] = h_new


def rmappo_forward(x, hxs, mask, avail, params):
    B, D = x.shape
    H = hxs.shape[-1]
    A = avail.shape[-1]
    Dp, Hp, Ap = (_round_up(d, LANE) for d in (D, H, A))

    # Batch tile: multiple of 8 sublanes, capped at 512 rows; pad batch to a grid multiple.
    TB = min(512, _round_up(B, 8))
    Bp = _round_up(B, TB)
    grid = (Bp // TB,)

    f32 = jnp.float32
    xp = jnp.zeros((Bp, Dp), f32).at[:B, :D].set(x.astype(f32))
    hp = jnp.zeros((Bp, Hp), f32).at[:B, :H].set(hxs.astype(f32))
    mp = jnp.zeros((Bp, Hp), f32).at[:B, :].set(
        jnp.broadcast_to(mask.astype(f32).reshape(B, 1), (B, Hp)))
    ap = jnp.zeros((Bp, Ap), f32).at[:B, :A].set(avail.astype(f32))

    vecs = params["vecs"]
    w1, w2, gru, aw = params["w1_t"], params["w2_t"], params["gru_w"], params["act_w_t"]
    W = vecs.shape[-1]

    inputs = (xp, hp, mp, ap, vecs, w1, w2, gru, aw)
    flops = 2 * Bp * (Dp * Hp + Hp * Hp + 2 * Hp * 3 * Hp + Hp * Ap)
    transcendentals = Bp * (3 * Hp + 4)
    bytes_accessed = (sum(int(a.size) * a.dtype.itemsize for a in inputs)
                      + Bp * Ap * 4 + Bp * Hp * 4)

    kernel = functools.partial(rmappo_kernel, D=D, H=H, Dp=Dp, Hp=Hp, Ap=Ap)

    action, hxs_out = pl.pallas_call(
        kernel,
        out_shape=(jax.ShapeDtypeStruct((Bp, Ap), f32),
                   jax.ShapeDtypeStruct((Bp, Hp), f32)),
        grid=grid,
        in_specs=[
            pl.BlockSpec((TB, Dp), lambda i: (i, 0)),            # x
            pl.BlockSpec((TB, Hp), lambda i: (i, 0)),            # hxs
            pl.BlockSpec((TB, Hp), lambda i: (i, 0)),            # mask (broadcast)
            pl.BlockSpec((TB, Ap), lambda i: (i, 0)),            # available_actions
            pl.BlockSpec((VROWS_PAD, W), lambda i: (0, 0)),      # packed bias/LN slab
            pl.BlockSpec((Dp, Hp), lambda i: (0, 0)),            # fc1 weight (bf16)
            pl.BlockSpec((Hp, Hp), lambda i: (0, 0)),            # fc2 weight (bf16)
            pl.BlockSpec((2, Hp, 3 * Hp), lambda i: (0, 0, 0)),  # GRU W_ih / W_hh (bf16)
            pl.BlockSpec((Hp, Ap), lambda i: (0, 0)),            # action head weight (bf16)
        ],
        out_specs=(pl.BlockSpec((TB, Ap), lambda i: (i, 0)),
                   pl.BlockSpec((TB, Hp), lambda i: (i, 0))),
        compiler_params=pltpu.CompilerParams(
            dimension_semantics=("parallel",)),
        cost_estimate=pl.CostEstimate(
            flops=flops, transcendentals=transcendentals,
            bytes_accessed=bytes_accessed),
    )(*inputs)

    # PyTorch returns h_n transposed to (batch, num_layers=1, hidden).
    return action[:B, :A], hxs_out[:B, None, :H]


def pack_params(raw, D, H, A):
    """Pad to lane width, transpose to (in, out), fuse GRU gates, pack small vectors."""
    Dp, Hp, Ap = (_round_up(d, LANE) for d in (D, H, A))
    W = max(Dp, Hp, Ap)

    vecs = jnp.zeros((VROWS_PAD, W), jnp.float32)

    def setrow(v, i, arr):
        return v.at[i, :arr.shape[0]].set(arr.astype(jnp.float32))

    vecs = setrow(vecs, ROW_FN_W, raw["fn_w"])
    vecs = setrow(vecs, ROW_FN_B, raw["fn_b"])
    vecs = setrow(vecs, ROW_B1, raw["b1"])
    vecs = setrow(vecs, ROW_LN1_W, raw["ln1_w"])
    vecs = setrow(vecs, ROW_LN1_B, raw["ln1_b"])
    vecs = setrow(vecs, ROW_B2, raw["b2"])
    vecs = setrow(vecs, ROW_LN2_W, raw["ln2_w"])
    vecs = setrow(vecs, ROW_LN2_B, raw["ln2_b"])
    bih = raw["bih"].reshape(3, H)
    bhh = raw["bhh"].reshape(3, H)
    vecs = setrow(vecs, ROW_BIR, bih[0])
    vecs = setrow(vecs, ROW_BIZ, bih[1])
    vecs = setrow(vecs, ROW_BIN, bih[2])
    vecs = setrow(vecs, ROW_BHR, bhh[0])
    vecs = setrow(vecs, ROW_BHZ, bhh[1])
    vecs = setrow(vecs, ROW_BHN, bhh[2])
    vecs = setrow(vecs, ROW_NORM_W, raw["norm_w"])
    vecs = setrow(vecs, ROW_NORM_B, raw["norm_b"])
    vecs = setrow(vecs, ROW_ACT_B, raw["act_b"])

    def pad2(a, r, c):
        return jnp.zeros((r, c), jnp.float32).at[:a.shape[0], :a.shape[1]].set(a)

    def gate_stack(w):  # w: (3H, H) PyTorch layout [W_r; W_z; W_n] -> (Hp, 3*Hp)
        w3 = w.reshape(3, H, H)
        out = jnp.zeros((Hp, 3 * Hp), jnp.float32)
        for g in range(3):
            out = out.at[:H, g * Hp:g * Hp + H].set(w3[g].T)
        return out

    return dict(
        vecs=vecs,
        w1_t=pad2(raw["w1"].T, Dp, Hp).astype(jnp.bfloat16),
        w2_t=pad2(raw["w2"].T, Hp, Hp).astype(jnp.bfloat16),
        gru_w=jnp.stack([gate_stack(raw["wih"]),
                         gate_stack(raw["whh"])]).astype(jnp.bfloat16),
        act_w_t=pad2(raw["act_w"].T, Hp, Ap).astype(jnp.bfloat16),
    )


def init_params(key, input_dim, hidden, output_dim):
    """Deterministic synthetic init following PyTorch default schemes
    (Linear/GRU: U(-1/sqrt(fan_in), 1/sqrt(fan_in)); LayerNorm: ones/zeros)."""
    ks = jax.random.split(key, 10)

    def unif(k, fan_in, shape):
        bound = 1.0 / float(fan_in) ** 0.5
        return jax.random.uniform(k, shape, jnp.float32, -bound, bound)

    raw = dict(
        fn_w=jnp.ones((input_dim,), jnp.float32),
        fn_b=jnp.zeros((input_dim,), jnp.float32),
        w1=unif(ks[0], input_dim, (hidden, input_dim)),
        b1=unif(ks[1], input_dim, (hidden,)),
        ln1_w=jnp.ones((hidden,), jnp.float32),
        ln1_b=jnp.zeros((hidden,), jnp.float32),
        w2=unif(ks[2], hidden, (hidden, hidden)),
        b2=unif(ks[3], hidden, (hidden,)),
        ln2_w=jnp.ones((hidden,), jnp.float32),
        ln2_b=jnp.zeros((hidden,), jnp.float32),
        wih=unif(ks[4], hidden, (3 * hidden, hidden)),   # [W_ir; W_iz; W_in]
        whh=unif(ks[5], hidden, (3 * hidden, hidden)),   # [W_hr; W_hz; W_hn]
        bih=unif(ks[6], hidden, (3 * hidden,)),
        bhh=unif(ks[7], hidden, (3 * hidden,)),
        norm_w=jnp.ones((hidden,), jnp.float32),
        norm_b=jnp.zeros((hidden,), jnp.float32),
        act_w=unif(ks[8], hidden, (output_dim, hidden)),
        act_b=unif(ks[9], hidden, (output_dim,)),
    )
    return pack_params(raw, input_dim, hidden, output_dim)


if __name__ == "__main__":
    key = jax.random.PRNGKey(0)
    B, D, H, A = 4, 24, 32, 8   # batch, input_dim, hidden, output_dim

    kx, kh, kp = jax.random.split(key, 3)
    x = jax.random.normal(kx, (B, D), jnp.float32)
    hxs = jax.random.normal(kh, (B, H), jnp.float32)
    mask = jnp.ones((B, 1), jnp.float32).at[1, 0].set(0.0)          # episode-reset mask
    avail = (
        jnp.ones((B, A), jnp.float32)
        .at[0, 0].set(0.0)
        .at[2, 3:5].set(0.0)
    )
    params = init_params(kp, D, H, A)

    action, hxs_out = rmappo_forward(x, hxs, mask, avail, params)
    jax.block_until_ready((action, hxs_out))

    assert action.shape == (B, A) and hxs_out.shape == (B, 1, H)
    assert bool(jnp.all(jnp.isfinite(hxs_out)))
    assert bool(jnp.all(jnp.sum(action, axis=-1) >= 1.0))   # one-hot(ish) rows
    assert bool(jnp.all(action * (avail == 0.0) == 0.0))    # never picks masked actions
    print("KERNEL_OK")
</pallas_src>

<mosaic_0001>
module attributes {stable_mosaic.version = 11 : i64} {
  func.func @rmappo_kernel(%arg0: i32, %arg1: memref<8x128xf32, #tpu.memory_space<vmem>>, %arg2: memref<8x128xf32, #tpu.memory_space<vmem>>, %arg3: memref<8x128xf32, #tpu.memory_space<vmem>>, %arg4: memref<8x128xf32, #tpu.memory_space<vmem>>, %arg5: memref<24x128xf32, #tpu.memory_space<vmem>>, %arg6: memref<128x128xbf16, #tpu.memory_space<vmem>>, %arg7: memref<128x128xbf16, #tpu.memory_space<vmem>>, %arg8: memref<2x128x384xbf16, #tpu.memory_space<vmem>>, %arg9: memref<128x128xbf16, #tpu.memory_space<vmem>>, %arg10: memref<8x128xf32, #tpu.memory_space<vmem>>, %arg11: memref<8x128xf32, #tpu.memory_space<vmem>>) attributes {dimension_semantics = [#tpu.dimension_semantics<parallel>], iteration_bounds = array<i64: 1>, scalar_prefetch = 0 : i64, scratch_operands = 0 : i64, tpu.core_type = #tpu.core_type<tc>, window_params = [{transform_indices = @transform_0, window_bounds = array<i64: 8, 128>}, {transform_indices = @transform_1, window_bounds = array<i64: 8, 128>}, {transform_indices = @transform_2, window_bounds = array<i64: 8, 128>}, {transform_indices = @transform_3, window_bounds = array<i64: 8, 128>}, {pipeline_mode = #tpu.pipeline_mode<synchronous>, transform_indices = @transform_4, window_bounds = array<i64: 24, 128>}, {pipeline_mode = #tpu.pipeline_mode<synchronous>, transform_indices = @transform_5, window_bounds = array<i64: 128, 128>}, {pipeline_mode = #tpu.pipeline_mode<synchronous>, transform_indices = @transform_6, window_bounds = array<i64: 128, 128>}, {pipeline_mode = #tpu.pipeline_mode<synchronous>, transform_indices = @transform_7, window_bounds = array<i64: 2, 128, 384>}, {pipeline_mode = #tpu.pipeline_mode<synchronous>, transform_indices = @transform_8, window_bounds = array<i64: 128, 128>}, {transform_indices = @transform_9, window_bounds = array<i64: 8, 128>}, {transform_indices = @transform_10, window_bounds = array<i64: 8, 128>}]} {
    %c0 = arith.constant 0 : index
    %c0_0 = arith.constant 0 : index
    %0 = vector.load %arg5[%c0, %c0_0] : memref<24x128xf32, #tpu.memory_space<vmem>>, vector<24x128xf32>
    %c0_1 = arith.constant 0 : index
    %c0_2 = arith.constant 0 : index
    %1 = vector.load %arg1[%c0_1, %c0_2] : memref<8x128xf32, #tpu.memory_space<vmem>>, vector<8x128xf32>
    %2 = vector.extract_strided_slice %0 {offsets = [0, 0], sizes = [1, 128], strides = [1, 1]} : vector<24x128xf32> to vector<1x128xf32>
    %3 = vector.extract_strided_slice %0 {offsets = [1, 0], sizes = [1, 128], strides = [1, 1]} : vector<24x128xf32> to vector<1x128xf32>
    %cst = arith.constant dense<0.000000e+00> : vector<8xf32>
    %4 = vector.multi_reduction <add>, %1, %cst [1] : vector<8x128xf32> to vector<8xf32>
    %5 = vector.shape_cast %4 : vector<8xf32> to vector<8x1xf32>
    %cst_3 = arith.constant 0.0416666679 : f32
    %6 = vector.broadcast %cst_3 : f32 to vector<8x1xf32>
    %7 = arith.mulf %5, %6 : vector<8x1xf32>
    %8 = arith.mulf %1, %1 : vector<8x128xf32>
    %cst_4 = arith.constant dense<0.000000e+00> : vector<8xf32>
    %9 = vector.multi_reduction <add>, %8, %cst_4 [1] : vector<8x128xf32> to vector<8xf32>
    %10 = vector.shape_cast %9 : vector<8xf32> to vector<8x1xf32>
    %cst_5 = arith.constant 0.0416666679 : f32
    %11 = vector.broadcast %cst_5 : f32 to vector<8x1xf32>
    %12 = arith.mulf %10, %11 : vector<8x1xf32>
    %13 = arith.mulf %7, %7 : vector<8x1xf32>
    %14 = arith.subf %12, %13 : vector<8x1xf32>
    %15 = vector.broadcast %7 : vector<8x1xf32> to vector<8x128xf32>
    %16 = arith.subf %1, %15 : vector<8x128xf32>
    %cst_6 = arith.constant 9.99999974E-6 : f32
    %17 = vector.broadcast %cst_6 : f32 to vector<8x1xf32>
    %18 = arith.addf %14, %17 : vector<8x1xf32>
    %19 = math.rsqrt %18 : vector<8x1xf32>
    %20 = vector.broadcast %19 : vector<8x1xf32> to vector<8x128xf32>
    %21 = arith.mulf %16, %20 : vector<8x128xf32>
    %22 = vector.broadcast %2 : vector<1x128xf32> to vector<8x128xf32>
    %23 = arith.mulf %21, %22 : vector<8x128xf32>
    %24 = vector.broadcast %3 : vector<1x128xf32> to vector<8x128xf32>
    %25 = arith.addf %23, %24 : vector<8x128xf32>
    %26 = arith.truncf %25 : vector<8x128xf32> to vector<8x128xbf16>
    %c0_7 = arith.constant 0 : index
    %c0_8 = arith.constant 0 : index
    %27 = vector.load %arg6[%c0_7, %c0_8] : memref<128x128xbf16, #tpu.memory_space<vmem>>, vector<128x128xbf16>
    %cst_9 = arith.constant dense<0.000000e+00> : vector<8x128xf32>
    %28 = tpu.matmul %26, %27, %cst_9 {dimension_numbers = #tpu.dot_dimension_numbers<[1], [0], [0], [1], [0, 0, 1, 1], [], []>} : vector<8x128xbf16>, vector<128x128xbf16>, vector<8x128xf32> -> vector<8x128xf32>
    %29 = vector.extract_strided_slice %0 {offsets = [2, 0], sizes = [1, 128], strides = [1, 1]} : vector<24x128xf32> to vector<1x128xf32>
    %30 = vector.broadcast %29 : vector<1x128xf32> to vector<8x128xf32>
    %31 = arith.addf %28, %30 : vector<8x128xf32>
    %cst_10 = arith.constant 0.000000e+00 : f32
    %32 = vector.broadcast %cst_10 : f32 to vector<8x128xf32>
    %33 = arith.maximumf %31, %32 : vector<8x128xf32>
    %34 = vector.extract_strided_slice %0 {offsets = [3, 0], sizes = [1, 128], strides = [1, 1]} : vector<24x128xf32> to vector<1x128xf32>
    %35 = vector.extract_strided_slice %0 {offsets = [4, 0], sizes = [1, 128], strides = [1, 1]} : vector<24x128xf32> to vector<1x128xf32>
    %cst_11 = arith.constant dense<0.000000e+00> : vector<8xf32>
    %36 = vector.multi_reduction <add>, %33, %cst_11 [1] : vector<8x128xf32> to vector<8xf32>
    %37 = vector.shape_cast %36 : vector<8xf32> to vector<8x1xf32>
    %cst_12 = arith.constant 3.125000e-02 : f32
    %38 = vector.broadcast %cst_12 : f32 to vector<8x1xf32>
    %39 = arith.mulf %37, %38 : vector<8x1xf32>
    %40 = arith.mulf %33, %33 : vector<8x128xf32>
    %cst_13 = arith.constant dense<0.000000e+00> : vector<8xf32>
    %41 = vector.multi_reduction <add>, %40, %cst_13 [1] : vector<8x128xf32> to vector<8xf32>
    %42 = vector.shape_cast %41 : vector<8xf32> to vector<8x1xf32>
    %cst_14 = arith.constant 3.125000e-02 : f32
    %43 = vector.broadcast %cst_14 : f32 to vector<8x1xf32>
    %44 = arith.mulf %42, %43 : vector<8x1xf32>
    %45 = arith.mulf %39, %39 : vector<8x1xf32>
    %46 = arith.subf %44, %45 : vector<8x1xf32>
    %47 = vector.broadcast %39 : vector<8x1xf32> to vector<8x128xf32>
    %48 = arith.subf %33, %47 : vector<8x128xf32>
    %cst_15 = arith.constant 9.99999974E-6 : f32
    %49 = vector.broadcast %cst_15 : f32 to vector<8x1xf32>
    %50 = arith.addf %46, %49 : vector<8x1xf32>
    %51 = math.rsqrt %50 : vector<8x1xf32>
    %52 = vector.broadcast %51 : vector<8x1xf32> to vector<8x128xf32>
    %53 = arith.mulf %48, %52 : vector<8x128xf32>
    %54 = vector.broadcast %34 : vector<1x128xf32> to vector<8x128xf32>
    %55 = arith.mulf %53, %54 : vector<8x128xf32>
    %56 = vector.broadcast %35 : vector<1x128xf32> to vector<8x128xf32>
    %57 = arith.addf %55, %56 : vector<8x128xf32>
    %58 = arith.truncf %57 : vector<8x128xf32> to vector<8x128xbf16>
    %c0_16 = arith.constant 0 : index
    %c0_17 = arith.constant 0 : index
    %59 = vector.load %arg7[%c0_16, %c0_17] : memref<128x128xbf16, #tpu.memory_space<vmem>>, vector<128x128xbf16>
    %cst_18 = arith.constant dense<0.000000e+00> : vector<8x128xf32>
    %60 = tpu.matmul %58, %59, %cst_18 {dimension_numbers = #tpu.dot_dimension_numbers<[1], [0], [0], [1], [0, 0, 1, 1], [], []>} : vector<8x128xbf16>, vector<128x128xbf16>, vector<8x128xf32> -> vector<8x128xf32>
    %61 = vector.extract_strided_slice %0 {offsets = [5, 0], sizes = [1, 128], strides = [1, 1]} : vector<24x128xf32> to vector<1x128xf32>
    %62 = vector.broadcast %61 : vector<1x128xf32> to vector<8x128xf32>
    %63 = arith.addf %60, %62 : vector<8x128xf32>
    %cst_19 = arith.constant 0.000000e+00 : f32
    %64 = vector.broadcast %cst_19 : f32 to vector<8x128xf32>
    %65 = arith.maximumf %63, %64 : vector<8x128xf32>
    %66 = vector.extract_strided_slice %0 {offsets = [6, 0], sizes = [1, 128], strides = [1, 1]} : vector<24x128xf32> to vector<1x128xf32>
    %67 = vector.extract_strided_slice %0 {offsets = [7, 0], sizes = [1, 128], strides = [1, 1]} : vector<24x128xf32> to vector<1x128xf32>
    %cst_20 = arith.constant dense<0.000000e+00> : vector<8xf32>
    %68 = vector.multi_reduction <add>, %65, %cst_20 [1] : vector<8x128xf32> to vector<8xf32>
    %69 = vector.shape_cast %68 : vector<8xf32> to vector<8x1xf32>
    %cst_21 = arith.constant 3.125000e-02 : f32
    %70 = vector.broadcast %cst_21 : f32 to vector<8x1xf32>
    %71 = arith.mulf %69, %70 : vector<8x1xf32>
    %72 = arith.mulf %65, %65 : vector<8x128xf32>
    %cst_22 = arith.constant dense<0.000000e+00> : vector<8xf32>
    %73 = vector.multi_reduction <add>, %72, %cst_22 [1] : vector<8x128xf32> to vector<8xf32>
    %74 = vector.shape_cast %73 : vector<8xf32> to vector<8x1xf32>
    %cst_23 = arith.constant 3.125000e-02 : f32
    %75 = vector.broadcast %cst_23 : f32 to vector<8x1xf32>
    %76 = arith.mulf %74, %75 : vector<8x1xf32>
    %77 = arith.mulf %71, %71 : vector<8x1xf32>
    %78 = arith.subf %76, %77 : vector<8x1xf32>
    %79 = vector.broadcast %71 : vector<8x1xf32> to vector<8x128xf32>
    %80 = arith.subf %65, %79 : vector<8x128xf32>
    %cst_24 = arith.constant 9.99999974E-6 : f32
    %81 = vector.broadcast %cst_24 : f32 to vector<8x1xf32>
    %82 = arith.addf %78, %81 : vector<8x1xf32>
    %83 = math.rsqrt %82 : vector<8x1xf32>
    %84 = vector.broadcast %83 : vector<8x1xf32> to vector<8x128xf32>
    %85 = arith.mulf %80, %84 : vector<8x128xf32>
    %86 = vector.broadcast %66 : vector<1x128xf32> to vector<8x128xf32>
    %87 = arith.mulf %85, %86 : vector<8x128xf32>
    %88 = vector.broadcast %67 : vector<1x128xf32> to vector<8x128xf32>
    %89 = arith.addf %87, %88 : vector<8x128xf32>
    %c0_25 = arith.constant 0 : index
    %c0_26 = arith.constant 0 : index
    %90 = vector.load %arg2[%c0_25, %c0_26] : memref<8x128xf32, #tpu.memory_space<vmem>>, vector<8x128xf32>
    %c0_27 = arith.constant 0 : index
    %c0_28 = arith.constant 0 : index
    %91 = vector.load %arg3[%c0_27, %c0_28] : memref<8x128xf32, #tpu.memory_space<vmem>>, vector<8x128xf32>
    %92 = arith.mulf %90, %91 : vector<8x128xf32>
    %93 = arith.truncf %89 : vector<8x128xf32> to vector<8x128xbf16>
    %c0_29 = arith.constant 0 : index
    %c0_30 = arith.constant 0 : index
    %c0_31 = arith.constant 0 : index
    %94 = vector.load %arg8[%c0_29, %c0_30, %c0_31] : memref<2x128x384xbf16, #tpu.memory_space<vmem>>, vector<1x128x384xbf16>
    %95 = vector.shape_cast %94 : vector<1x128x384xbf16> to vector<128x384xbf16>
    %cst_32 = arith.constant dense<0.000000e+00> : vector<8x384xf32>
    %96 = tpu.matmul %93, %95, %cst_32 {dimension_numbers = #tpu.dot_dimension_numbers<[1], [0], [0], [1], [0, 0, 1, 1], [], []>} : vector<8x128xbf16>, vector<128x384xbf16>, vector<8x384xf32> -> vector<8x384xf32>
    %97 = arith.truncf %92 : vector<8x128xf32> to vector<8x128xbf16>
    %c1 = arith.constant 1 : index
    %c0_33 = arith.constant 0 : index
    %c0_34 = arith.constant 0 : index
    %98 = vector.load %arg8[%c1, %c0_33, %c0_34] : memref<2x128x384xbf16, #tpu.memory_space<vmem>>, vector<1x128x384xbf16>
    %99 = vector.shape_cast %98 : vector<1x128x384xbf16> to vector<128x384xbf16>
    %cst_35 = arith.constant dense<0.000000e+00> : vector<8x384xf32>
    %100 = tpu.matmul %97, %99, %cst_35 {dimension_numbers = #tpu.dot_dimension_numbers<[1], [0], [0], [1], [0, 0, 1, 1], [], []>} : vector<8x128xbf16>, vector<128x384xbf16>, vector<8x384xf32> -> vector<8x384xf32>
    %101 = vector.extract_strided_slice %96 {offsets = [0, 0], sizes = [8, 128], strides = [1, 1]} : vector<8x384xf32> to vector<8x128xf32>
    %102 = vector.extract_strided_slice %96 {offsets = [0, 128], sizes = [8, 128], strides = [1, 1]} : vector<8x384xf32> to vector<8x128xf32>
    %103 = vector.extract_strided_slice %96 {offsets = [0, 256], sizes = [8, 128], strides = [1, 1]} : vector<8x384xf32> to vector<8x128xf32>
    %104 = vector.extract_strided_slice %100 {offsets = [0, 0], sizes = [8, 128], strides = [1, 1]} : vector<8x384xf32> to vector<8x128xf32>
    %105 = vector.extract_strided_slice %100 {offsets = [0, 128], sizes = [8, 128], strides = [1, 1]} : vector<8x384xf32> to vector<8x128xf32>
    %106 = vector.extract_strided_slice %100 {offsets = [0, 256], sizes = [8, 128], strides = [1, 1]} : vector<8x384xf32> to vector<8x128xf32>
    %107 = vector.extract_strided_slice %0 {offsets = [8, 0], sizes = [1, 128], strides = [1, 1]} : vector<24x128xf32> to vector<1x128xf32>
    %108 = vector.broadcast %107 : vector<1x128xf32> to vector<8x128xf32>
    %109 = arith.addf %101, %108 : vector<8x128xf32>
    %110 = arith.addf %109, %104 : vector<8x128xf32>
    %111 = vector.extract_strided_slice %0 {offsets = [11, 0], sizes = [1, 128], strides = [1, 1]} : vector<24x128xf32> to vector<1x128xf32>
    %112 = vector.broadcast %111 : vector<1x128xf32> to vector<8x128xf32>
    %113 = arith.addf %110, %112 : vector<8x128xf32>
    %114 = arith.negf %113 : vector<8x128xf32>
    %115 = math.exp %114 : vector<8x128xf32>
    %cst_36 = arith.constant 1.000000e+00 : f32
    %116 = vector.broadcast %cst_36 : f32 to vector<8x128xf32>
    %117 = arith.addf %116, %115 : vector<8x128xf32>
    %118 = arith.divf %116, %117 : vector<8x128xf32>
    %119 = vector.extract_strided_slice %0 {offsets = [9, 0], sizes = [1, 128], strides = [1, 1]} : vector<24x128xf32> to vector<1x128xf32>
    %120 = vector.broadcast %119 : vector<1x128xf32> to vector<8x128xf32>
    %121 = arith.addf %102, %120 : vector<8x128xf32>
    %122 = arith.addf %121, %105 : vector<8x128xf32>
    %123 = vector.extract_strided_slice %0 {offsets = [12, 0], sizes = [1, 128], strides = [1, 1]} : vector<24x128xf32> to vector<1x128xf32>
    %124 = vector.broadcast %123 : vector<1x128xf32> to vector<8x128xf32>
    %125 = arith.addf %122, %124 : vector<8x128xf32>
    %126 = arith.negf %125 : vector<8x128xf32>
    %127 = math.exp %126 : vector<8x128xf32>
    %cst_37 = arith.constant 1.000000e+00 : f32
    %128 = vector.broadcast %cst_37 : f32 to vector<8x128xf32>
    %129 = arith.addf %128, %127 : vector<8x128xf32>
    %130 = arith.divf %128, %129 : vector<8x128xf32>
    %131 = vector.extract_strided_slice %0 {offsets = [10, 0], sizes = [1, 128], strides = [1, 1]} : vector<24x128xf32> to vector<1x128xf32>
    %132 = vector.broadcast %131 : vector<1x128xf32> to vector<8x128xf32>
    %133 = arith.addf %103, %132 : vector<8x128xf32>
    %134 = vector.extract_strided_slice %0 {offsets = [13, 0], sizes = [1, 128], strides = [1, 1]} : vector<24x128xf32> to vector<1x128xf32>
    %135 = vector.broadcast %134 : vector<1x128xf32> to vector<8x128xf32>
    %136 = arith.addf %106, %135 : vector<8x128xf32>
    %137 = arith.mulf %118, %136 : vector<8x128xf32>
    %138 = arith.addf %133, %137 : vector<8x128xf32>
    %139 = math.tanh %138 : vector<8x128xf32>
    %cst_38 = arith.constant 1.000000e+00 : f32
    %140 = vector.broadcast %cst_38 : f32 to vector<8x128xf32>
    %141 = arith.subf %140, %130 : vector<8x128xf32>
    %142 = arith.mulf %141, %139 : vector<8x128xf32>
    %143 = arith.mulf %130, %92 : vector<8x128xf32>
    %144 = arith.addf %142, %143 : vector<8x128xf32>
    %145 = vector.extract_strided_slice %0 {offsets = [14, 0], sizes = [1, 128], strides = [1, 1]} : vector<24x128xf32> to vector<1x128xf32>
    %146 = vector.extract_strided_slice %0 {offsets = [15, 0], sizes = [1, 128], strides = [1, 1]} : vector<24x128xf32> to vector<1x128xf32>
    %cst_39 = arith.constant dense<0.000000e+00> : vector<8xf32>
    %147 = vector.multi_reduction <add>, %144, %cst_39 [1] : vector<8x128xf32> to vector<8xf32>
    %148 = vector.shape_cast %147 : vector<8xf32> to vector<8x1xf32>
    %cst_40 = arith.constant 3.125000e-02 : f32
    %149 = vector.broadcast %cst_40 : f32 to vector<8x1xf32>
    %150 = arith.mulf %148, %149 : vector<8x1xf32>
    %151 = arith.mulf %144, %144 : vector<8x128xf32>
    %cst_41 = arith.constant dense<0.000000e+00> : vector<8xf32>
    %152 = vector.multi_reduction <add>, %151, %cst_41 [1] : vector<8x128xf32> to vector<8xf32>
    %153 = vector.shape_cast %152 : vector<8xf32> to vector<8x1xf32>
    %cst_42 = arith.constant 3.125000e-02 : f32
    %154 = vector.broadcast %cst_42 : f32 to vector<8x1xf32>
    %155 = arith.mulf %153, %154 : vector<8x1xf32>
    %156 = arith.mulf %150, %150 : vector<8x1xf32>
    %157 = arith.subf %155, %156 : vector<8x1xf32>
    %158 = vector.broadcast %150 : vector<8x1xf32> to vector<8x128xf32>
    %159 = arith.subf %144, %158 : vector<8x128xf32>
    %cst_43 = arith.constant 9.99999974E-6 : f32
    %160 = vector.broadcast %cst_43 : f32 to vector<8x1xf32>
    %161 = arith.addf %157, %160 : vector<8x1xf32>
    %162 = math.rsqrt %161 : vector<8x1xf32>
    %163 = vector.broadcast %162 : vector<8x1xf32> to vector<8x128xf32>
    %164 = arith.mulf %159, %163 : vector<8x128xf32>
    %165 = vector.broadcast %145 : vector<1x128xf32> to vector<8x128xf32>
    %166 = arith.mulf %164, %165 : vector<8x128xf32>
    %167 = vector.broadcast %146 : vector<1x128xf32> to vector<8x128xf32>
    %168 = arith.addf %166, %167 : vector<8x128xf32>
    %169 = arith.truncf %168 : vector<8x128xf32> to vector<8x128xbf16>
    %c0_44 = arith.constant 0 : index
    %c0_45 = arith.constant 0 : index
    %170 = vector.load %arg9[%c0_44, %c0_45] : memref<128x128xbf16, #tpu.memory_space<vmem>>, vector<128x128xbf16>
    %cst_46 = arith.constant dense<0.000000e+00> : vector<8x128xf32>
    %171 = tpu.matmul %169, %170, %cst_46 {dimension_numbers = #tpu.dot_dimension_numbers<[1], [0], [0], [1], [0, 0, 1, 1], [], []>} : vector<8x128xbf16>, vector<128x128xbf16>, vector<8x128xf32> -> vector<8x128xf32>
    %172 = vector.extract_strided_slice %0 {offsets = [16, 0], sizes = [1, 128], strides = [1, 1]} : vector<24x128xf32> to vector<1x128xf32>
    %173 = vector.broadcast %172 : vector<1x128xf32> to vector<8x128xf32>
    %174 = arith.addf %171, %173 : vector<8x128xf32>
    %c0_47 = arith.constant 0 : index
    %c0_48 = arith.constant 0 : index
    %175 = vector.load %arg4[%c0_47, %c0_48] : memref<8x128xf32, #tpu.memory_space<vmem>>, vector<8x128xf32>
    %cst_49 = arith.constant 0.000000e+00 : f32
    %176 = vector.broadcast %cst_49 : f32 to vector<8x128xf32>
    %177 = arith.cmpf oeq, %175, %176 : vector<8x128xf32>
    %cst_50 = arith.constant -1.000000e+10 : f32
    %178 = vector.broadcast %cst_50 : f32 to vector<8x128xf32>
    %179 = arith.select %177, %178, %174 : vector<8x128xi1>, vector<8x128xf32>
    %cst_51 = arith.constant dense<0xFF800000> : vector<8xf32>
    %180 = vector.multi_reduction <maximumf>, %179, %cst_51 [1] : vector<8x128xf32> to vector<8xf32>
    %181 = vector.shape_cast %180 : vector<8xf32> to vector<8x1xf32>
    %182 = vector.broadcast %181 : vector<8x1xf32> to vector<8x128xf32>
    %183 = arith.cmpf oeq, %179, %182 : vector<8x128xf32>
    %184 = arith.extui %183 : vector<8x128xi1> to vector<8x128xi32>
    %185 = arith.sitofp %184 : vector<8x128xi32> to vector<8x128xf32>
    %c0_52 = arith.constant 0 : index
    %c0_53 = arith.constant 0 : index
    %186 = vector.load %arg10[%c0_52, %c0_53] : memref<8x128xf32, #tpu.memory_space<vmem>>, vector<8x128xf32>
    tpu.vector_store %arg10[%c0_52, %c0_53], %185 {strides = array<i32>} : memref<8x128xf32, #tpu.memory_space<vmem>>, vector<8x128xf32>,
    %c0_54 = arith.constant 0 : index
    %c0_55 = arith.constant 0 : index
    %187 = vector.load %arg11[%c0_54, %c0_55] : memref<8x128xf32, #tpu.memory_space<vmem>>, vector<8x128xf32>
    tpu.vector_store %arg11[%c0_54, %c0_55], %144 {strides = array<i32>} : memref<8x128xf32, #tpu.memory_space<vmem>>, vector<8x128xf32>,
    return
  }
  func.func @transform_0(%arg0: i32) -> (i32, i32) {
    %c0_i32 = arith.constant 0 : i32
    %c0_i32_0 = arith.constant 0 : i32
    return %arg0, %c0_i32 : i32, i32
  }
  func.func @transform_1(%arg0: i32) -> (i32, i32) {
    %c0_i32 = arith.constant 0 : i32
    %c0_i32_0 = arith.constant 0 : i32
    return %arg0, %c0_i32 : i32, i32
  }
  func.func @transform_2(%arg0: i32) -> (i32, i32) {
    %c0_i32 = arith.constant 0 : i32
    %c0_i32_0 = arith.constant 0 : i32
    return %arg0, %c0_i32 : i32, i32
  }
  func.func @transform_3(%arg0: i32) -> (i32, i32) {
    %c0_i32 = arith.constant 0 : i32
    %c0_i32_0 = arith.constant 0 : i32
    return %arg0, %c0_i32 : i32, i32
  }
  func.func @transform_4(%arg0: i32) -> (i32, i32) {
    %c0_i32 = arith.constant 0 : i32
    %c0_i32_0 = arith.constant 0 : i32
    %c0_i32_1 = arith.constant 0 : i32
    return %c0_i32, %c0_i32_0 : i32, i32
  }
  func.func @transform_5(%arg0: i32) -> (i32, i32) {
    %c0_i32 = arith.constant 0 : i32
    %c0_i32_0 = arith.constant 0 : i32
    %c0_i32_1 = arith.constant 0 : i32
    return %c0_i32, %c0_i32_0 : i32, i32
  }
  func.func @transform_6(%arg0: i32) -> (i32, i32) {
    %c0_i32 = arith.constant 0 : i32
    %c0_i32_0 = arith.constant 0 : i32
    %c0_i32_1 = arith.constant 0 : i32
    return %c0_i32, %c0_i32_0 : i32, i32
  }
  func.func @transform_7(%arg0: i32) -> (i32, i32, i32) {
    %c0_i32 = arith.constant 0 : i32
    %c0_i32_0 = arith.constant 0 : i32
    %c0_i32_1 = arith.constant 0 : i32
    %c0_i32_2 = arith.constant 0 : i32
    return %c0_i32, %c0_i32_0, %c0_i32_1 : i32, i32, i32
  }
  func.func @transform_8(%arg0: i32) -> (i32, i32) {
    %c0_i32 = arith.constant 0 : i32
    %c0_i32_0 = arith.constant 0 : i32
    %c0_i32_1 = arith.constant 0 : i32
    return %c0_i32, %c0_i32_0 : i32, i32
  }
  func.func @transform_9(%arg0: i32) -> (i32, i32) {
    %c0_i32 = arith.constant 0 : i32
    %c0_i32_0 = arith.constant 0 : i32
    return %arg0, %c0_i32 : i32, i32
  }
  func.func @transform_10(%arg0: i32) -> (i32, i32) {
    %c0_i32 = arith.constant 0 : i32
    %c0_i32_0 = arith.constant 0 : i32
    return %arg0, %c0_i32 : i32, i32
  }
}

</mosaic_0001>

<bundles_post_ra>
// kernel: tpu_custom_call.1
= control target key start
LH: loop header
LB: loop body
LE: loop exit
PB: predicated region body
PF: predicated region fallthrough
CT: control target
= control target key end

     0   :  { %16 = vsyncpa [#allocation3], 0  ;;  %s1980_s0 = inlined_call_operand.hbm [shape: f32[8,128], index: 0, kind: input, shape index: {}]   ;;  %s1981_s1 = inlined_call_operand.hbm [shape: f32[8,128], index: 1, kind: input, shape index: {}]   ;;  %s1982_s2 = inlined_call_operand.hbm [shape: f32[8,128], index: 2, kind: input, shape index: {}]   ;;  %s1983_s3 = inlined_call_operand.hbm [shape: f32[8,128], index: 3, kind: input, shape index: {}]   ;;  %s1984_s4 = inlined_call_operand.hbm [shape: f32[24,128], index: 4, kind: input, shape index: {}]   ;;  %s1985_s5 = inlined_call_operand.hbm [shape: bf16[128,128], index: 5, kind: input, shape index: {}]   ;;  %s1986_s6 = inlined_call_operand.hbm [shape: bf16[128,128], index: 6, kind: input, shape index: {}]   ;;  %s1987_s7 = inlined_call_operand.hbm [shape: bf16[2,128,384], index: 7, kind: input, shape index: {}]   ;;  %s1988_s8 = inlined_call_operand.hbm [shape: bf16[128,128], index: 8, kind: input, shape index: {}]   ;;  %s1989_s9 = inlined_call_operand.hbm [shape: f32[8,128], index: 9, kind: output, shape index: {0}]   ;;  %s1990_s10 = inlined_call_operand.hbm [shape: f32[8,128], index: 10, kind: output, shape index: {1}]  }
   0x1   :  { %17 = vsyncpa [#allocation6], 0 }
   0x2   :  { %18 = vsyncpa [#allocation9], 0 }
   0x3   :  { %19 = vsyncpa [#allocation12], 0 }
   0x4   :  { %20 = vsyncpa [#allocation15], 0 }
   0x5   :  { %21 = vsyncpa [#allocation4], 0 }
   0x6   :  { %22 = vsyncpa [#allocation19], 0  ;;  %s1738_s13 = smov [#allocation5]   ;;  %s1739_s15 = smov [#allocation8]  }
   0x7   :  { %s39_s14 = sshll.u32 %s1738_s13, 4  ;;  %s59_s16 = sshll.u32 %s1739_s15, 4  ;;  %s40_s14 = int_to_ptr.vmem [resolvable:$true] %s39_s14  ;;  %s60_s16 = int_to_ptr.vmem [resolvable:$true] %s59_s16 }
   0x8   :  { %s1512_s17 = scalar_lea.vmem %s40_s14, 128  ;;  %p1517_p1 = scmp.lt.s32.totalorder %s40_s14, %s40_s14 }
   0x9   :  { %p1513_p0 = scmp.ne.s32.totalorder %s40_s14, %s1512_s17  ;;  %p1518_p2 = scmp.lt.s32.totalorder %s1512_s17, %s1512_s17 }
   0xb   :  { %p1519_p3 = por %p1518_p2, %p1517_p1 }
   0xd   :  { %p1520_p4 = pnand %p1519_p3, %p1513_p0 }
   0xf   :  { %1523 = shalt.err (!%p1520_p4)
}
  0x10   :  { %42 = dma.hbm_to_vmem [thread:$0]  %s1981_s1, 128, %s40_s14, [#allocation6]  }
  0x11   :  { %s1532_s20 = scalar_lea.vmem %s60_s16, 128  ;;  %p1537_p6 = scmp.lt.s32.totalorder %s60_s16, %s60_s16 }
  0x12   :  { %p1533_p5 = scmp.ne.s32.totalorder %s60_s16, %s1532_s20  ;;  %p1538_p7 = scmp.lt.s32.totalorder %s1532_s20, %s1532_s20 }
  0x14   :  { %p1539_p8 = por %p1538_p7, %p1537_p6 }
  0x16   :  { %p1540_p9 = pnand %p1539_p8, %p1533_p5 }
  0x18   :  { %1543 = shalt.err (!%p1540_p9)
}
  0x19   :  { %62 = dma.hbm_to_vmem [thread:$0]  %s1983_s3, 128, %s60_s16, [#allocation9]  }
  0x1a   :  { %s1740_s23 = smov [#allocation11]  }
  0x1b   :  { %s80_s24 = sshll.u32 %s1740_s23, 4  ;;  %s81_s24 = int_to_ptr.vmem [resolvable:$true] %s80_s24 }
  0x1c   :  { %s1552_s25 = scalar_lea.vmem %s81_s24, 1024  ;;  %p1557_p11 = scmp.lt.s32.totalorder %s81_s24, %s81_s24 }
  0x1d   :  { %p1553_p10 = scmp.ne.s32.totalorder %s81_s24, %s1552_s25  ;;  %p1558_p12 = scmp.lt.s32.totalorder %s1552_s25, %s1552_s25 }
  0x1f   :  { %p1559_p13 = por %p1558_p12, %p1557_p11 }
  0x21   :  { %p1560_p0 = pnand %p1559_p13, %p1553_p10 }
  0x23   :  { %1563 = shalt.err (!%p1560_p0)
}
  0x24   :  { %s1741_s1 = smov 64   ;;  %s1742_s26 = smov 4  }
  0x25   :  { %86 = dma.hbm_to_vmem [thread:$0]  %s1985_s5, 1024, %s81_s24, [#allocation12], %s1741_s1, %s1741_s1, %s1742_s26  }
  0x26   :  { %s1743_s3 = smov [#allocation14]  }
  0x27   :  { %s104_s29 = sshll.u32 %s1743_s3, 4  ;;  %s105_s29 = int_to_ptr.vmem [resolvable:$true] %s104_s29 }
  0x28   :  { %s1572_s30 = scalar_lea.vmem %s105_s29, 6144  ;;  %p1577_p2 = scmp.lt.s32.totalorder %s105_s29, %s105_s29 }
  0x29   :  { %p1573_p1 = scmp.ne.s32.totalorder %s105_s29, %s1572_s30  ;;  %p1578_p3 = scmp.lt.s32.totalorder %s1572_s30, %s1572_s30 }
  0x2b   :  { %p1579_p4 = por %p1578_p3, %p1577_p2 }
  0x2d   :  { %p1580_p5 = pnand %p1579_p4, %p1573_p1 }
  0x2f   :  { %1583 = shalt.err (!%p1580_p5)
}
  0x30   :  { %s1744_s11 = smov 192   ;;  %s1745_s12 = smov 12  }
  0x31   :  { %110 = dma.hbm_to_vmem [thread:$0]  %s1987_s7, 6144, %s105_s29, [#allocation15], %s1744_s11, %s1744_s11, %s1745_s12  }
  0x32   :  { %s1746_s15 = smov [#allocation2]   ;;  %s1747_s17 = smov [#allocation7]  }
  0x33   :  { %s29_s16 = sshll.u32 %s1746_s15, 4  ;;  %s49_s5 = sshll.u32 %s1747_s17, 4  ;;  %s30_s16 = int_to_ptr.vmem [resolvable:$true] %s29_s16  ;;  %s50_s5 = int_to_ptr.vmem [resolvable:$true] %s49_s5 }
  0x34   :  { %s1592_s18 = scalar_lea.vmem %s30_s16, 128  ;;  %p1597_p7 = scmp.lt.s32.totalorder %s30_s16, %s30_s16 }
  0x35   :  { %p1593_p6 = scmp.ne.s32.totalorder %s30_s16, %s1592_s18  ;;  %p1598_p8 = scmp.lt.s32.totalorder %s1592_s18, %s1592_s18 }
  0x37   :  { %p1599_p9 = por %p1598_p8, %p1597_p7 }
  0x39   :  { %p1600_p10 = pnand %p1599_p9, %p1593_p6 }
  0x3b   :  { %1603 = shalt.err (!%p1600_p10)
}
  0x3c   :  { %32 = dma.hbm_to_vmem [thread:$0]  %s1980_s0, 128, %s30_s16, [#allocation3]  }
  0x3d   :  { %s1612_s21 = scalar_lea.vmem %s50_s5, 128  ;;  %p1617_p12 = scmp.lt.s32.totalorder %s50_s5, %s50_s5 }
  0x3e   :  { %p1613_p11 = scmp.ne.s32.totalorder %s50_s5, %s1612_s21  ;;  %p1618_p13 = scmp.lt.s32.totalorder %s1612_s21, %s1612_s21 }
  0x40   :  { %p1619_p0 = por %p1618_p13, %p1617_p12 }
  0x42   :  { %p1620_p1 = pnand %p1619_p0, %p1613_p11 }
  0x44   :  { %1623 = shalt.err (!%p1620_p1)
}
  0x45   :  { %52 = dma.hbm_to_vmem [thread:$0]  %s1982_s2, 128, %s50_s5, [#allocation6]  }
  0x46   :  { %s1748_s23 = smov [#allocation10]  }
  0x47   :  { %s68_s24 = sshll.u32 %s1748_s23, 4  ;;  %s69_s24 = int_to_ptr.vmem [resolvable:$true] %s68_s24 }
  0x48   :  { %s1632_s25 = scalar_lea.vmem %s69_s24, 384  ;;  %p1637_p3 = scmp.lt.s32.totalorder %s69_s24, %s69_s24 }
  0x49   :  { %p1633_p2 = scmp.ne.s32.totalorder %s69_s24, %s1632_s25  ;;  %p1638_p4 = scmp.lt.s32.totalorder %s1632_s25, %s1632_s25 }
  0x4b   :  { %p1639_p5 = por %p1638_p4, %p1637_p3 }
  0x4d   :  { %p1640_p6 = pnand %p1639_p5, %p1633_p2 }
  0x4f   :  { %1643 = shalt.err (!%p1640_p6)
}
  0x50   :  { %s1749_s0 = smov 128   ;;  %s1750_s27 = smov 8  }
  0x51   :  { %74 = dma.hbm_to_vmem [thread:$0]  %s1984_s4, 384, %s69_s24, [#allocation9], %s1749_s0, %s1749_s0, %s1750_s27  }
  0x52   :  { %s1751_s29 = smov [#allocation13]   ;;  %s1752_s2 = smov [#allocation16]  }
  0x53   :  { %s92_s30 = sshll.u32 %s1751_s29, 4  ;;  %s116_s11 = sshll.u32 %s1752_s2, 4  ;;  %s93_s30 = int_to_ptr.vmem [resolvable:$true] %s92_s30  ;;  %s117_s11 = int_to_ptr.vmem [resolvable:$true] %s116_s11 }
  0x54   :  { %s1652_s12 = scalar_lea.vmem %s93_s30, 1024  ;;  %p1657_p8 = scmp.lt.s32.totalorder %s93_s30, %s93_s30 }
  0x55   :  { %p1653_p7 = scmp.ne.s32.totalorder %s93_s30, %s1652_s12  ;;  %p1658_p9 = scmp.lt.s32.totalorder %s1652_s12, %s1652_s12 }
  0x57   :  { %p1659_p10 = por %p1658_p9, %p1657_p8 }
  0x59   :  { %p1660_p11 = pnand %p1659_p10, %p1653_p7 }
  0x5b   :  { %1663 = shalt.err (!%p1660_p11)
}
  0x5c   :  { %98 = dma.hbm_to_vmem [thread:$0]  %s1986_s6, 1024, %s93_s30, [#allocation12], %s1741_s1, %s1741_s1, %s1742_s26  }
  0x5d   :  { %s1672_s4 = scalar_lea.vmem %s117_s11, 1024  ;;  %p1677_p13 = scmp.lt.s32.totalorder %s117_s11, %s117_s11 }
  0x5e   :  { %p1673_p12 = scmp.ne.s32.totalorder %s117_s11, %s1672_s4  ;;  %p1678_p0 = scmp.lt.s32.totalorder %s1672_s4, %s1672_s4 }
  0x60   :  { %p1679_p1 = por %p1678_p0, %p1677_p13 }
  0x62   :  { %p1680_p2 = pnand %p1679_p1, %p1673_p12 }
  0x64   :  { %1683 = shalt.err (!%p1680_p2)
}
  0x65   :  { %122 = dma.hbm_to_vmem [thread:$0]  %s1988_s8, 1024, %s117_s11, [#allocation15], %s1741_s1, %s1741_s1, %s1742_s26  }
  0x66   :  { %1724 = dma.done.wait [#allocation3], 128  }
  0x67   :  { %1725 = vsyncadd [#allocation3], 4294967168 }
  0x68   :  { %1726 = dma.done.wait [#allocation6], 256  }
  0x69   :  { %1727 = vsyncadd [#allocation6], 4294967040 }
  0x6a   :  { %1728 = dma.done.wait [#allocation9], 512  }
  0x6b   :  { %1729 = vsyncadd [#allocation9], 4294966784 }
  0x6c   :  { %1730 = dma.done.wait [#allocation12], 2048  }
  0x6d   :  { %1731 = vsyncadd [#allocation12], 4294965248 }
  0x6e   :  { %1732 = dma.done.wait [#allocation15], 7168  }
  0x6f   :  { %1733 = vsyncadd [#allocation15], 4294960128  ;;  %v154_v0 = vld [vmem:[#allocation2] sm:$0xff]  ;;  %v1398_v2 = vld [vmem:[#allocation11 + $0x38] sm:$0xff]   ;;  %v1753_v3 = vmov 0.0   ;;  %vm1754_vm0 = vmmov 0   ;;  %v168_v18 = vlaneseq }
  0x70   :  { %155 = vadd.xlane.f32.xlu0 %v154_v0  ;;  %v158_v1 = vmul.f32 %v154_v0, %v154_v0  ;;  %1278 = vmatprep.subr.bf16.mxu0 %v1753_v3  ;;  %v1399_v4 = vld [vmem:[#allocation11 + $0x30] sm:$0xff]   ;;  %v1400_v5 = vld [vmem:[#allocation11 + $0x28] sm:$0xff]   ;;  %v1401_v6 = vld [vmem:[#allocation11 + $0x20] sm:$0xff]   ;;  %s1756_s6 = smov [#allocation18]  }
  0x71   :  { %1298 = vmatprep.subr.bf16.mxu1 %v1753_v3  ;;  %1279 = vmatpush3.bf16.msra.mxu0 %v1398_v2  ;;  %v1402_v7 = vld [vmem:[#allocation11 + $0x18] sm:$0xff]   ;;  %v1403_v8 = vld [vmem:[#allocation11 + $0x10] sm:$0xff]   ;;  %v1404_v9 = vld [vmem:[#allocation11 + $0x8] sm:$0xff]   ;;  %v1862_v19 = vshrl.u32 %v168_v18, 7  ;;  %s1141_s8 = sshll.u32 %s1756_s6, 4  ;;  %s1142_s8 = int_to_ptr.vmem [resolvable:$true] %s1141_s8 }
  0x72   :  { %1280 = vmatprep.subr.bf16.mxu0 %v1753_v3  ;;  %1294 = vmatprep.mubr.msk.bf16.mxu0 %vm1754_vm0, %v1753_v3  ;;  %v1405_v10 = vld [vmem:[#allocation11] sm:$0xff]   ;;  %v1867_v21 = vld [vmem:[#allocation10] sm:$0xff]  ;;  %v1406_v40 = vld [vmem:[#allocation13 + $0x38] sm:$0xff]   ;;  %s1684_s1 = scalar_lea.vmem %s1142_s8, 128  ;;  %p1689_p4 = scmp.lt.s32.totalorder %s1142_s8, %s1142_s8 }
  0x73   :  { %1314 = vmatprep.mubr.msk.bf16.mxu1 %vm1754_vm0, %v1753_v3  ;;  %v1865_v20 = vsub.s32 0, %v1862_v19  ;;  %v175_v22 = vsub.s32 1, %v1862_v19  ;;  %v197_v31 = vsub.s32 2, %v1862_v19  ;;  %1299 = vmatpush3.bf16.msra.mxu1 %v1406_v40  ;;  %v1407_v41 = vld [vmem:[#allocation13 + $0x30] sm:$0xff]   ;;  %v1408_v42 = vld [vmem:[#allocation13 + $0x28] sm:$0xff]   ;;  %v1409_v43 = vld [vmem:[#allocation13 + $0x20] sm:$0xff]   ;;  %p1685_p3 = scmp.ne.s32.totalorder %s1142_s8, %s1684_s1  ;;  %p1690_p5 = scmp.lt.s32.totalorder %s1684_s1, %s1684_s1 }
  0x74   :  { %159 = vadd.xlane.f32.xlu0 %v158_v1  ;;  %1300 = vmatprep.subr.bf16.mxu1 %v1753_v3  ;;  %v1410_v44 = vld [vmem:[#allocation13 + $0x18] sm:$0xff]   ;;  %v1411_v45 = vld [vmem:[#allocation13 + $0x10] sm:$0xff]   ;;  %v1412_v46 = vld [vmem:[#allocation13 + $0x8] sm:$0xff]   ;;  %v303_v55 = vsub.s32 3, %v1862_v19  ;;  %v308_v56 = vsub.s32 4, %v1862_v19 }
  0x75   :  { %1281 = vmatpush3.bf16.msra.mxu0 %v1399_v4  ;;  %v171_v24 = vrot.slane %v1867_v21, %v1865_v20  ;;  %v176_v27 = vrot.slane %v1867_v21, %v175_v22  ;;  %v198_v32 = vrot.slane %v1867_v21, %v197_v31  ;;  %v1413_v47 = vld [vmem:[#allocation13] sm:$0xff]   ;;  %v1414_v1 = vld [vmem:[#allocation14 + $0xa8] ss:$12 sps:$4 sm:$0xff]   ;;  %v1416_v2 = vld [vmem:[#allocation14 + $0xac] ss:$12 sps:$4 sm:$0xff]   ;;  %p1691_p6 = por %p1690_p5, %p1689_p4 }
  0x76   :  { %1282 = vmatprep.subr.bf16.mxu0 %v1753_v3  ;;  %v304_v58 = vrot.slane %v1867_v21, %v303_v55  ;;  %v309_v61 = vrot.slane %v1867_v21, %v308_v56  ;;  %v1417_v4 = vld [vmem:[#allocation14 + $0xb0] ss:$12 sps:$4 sm:$0xff]   ;;  %v1422_v18 = vld [vmem:[#allocation14 + $0x78] ss:$12 sps:$4 sm:$0xff]   ;;  %v1445_v40 = vld [vmem:[#allocation14 + $0x8] ss:$12 sps:$4 sm:$0xff]  }
  0x77   :  { %1301 = vmatpush3.bf16.msra.mxu1 %v1407_v41  ;;  %v1448_v41 = vld [vmem:[#allocation14 + $0x16c] ss:$12 sps:$4 sm:$0xff]   ;;  %p1692_p7 = pnand %p1691_p6, %p1685_p3 }
  0x78   :  { %1302 = vmatprep.subr.bf16.mxu1 %v1753_v3 }
  0x79   :  { %1283 = vmatpush3.bf16.msra.mxu0 %v1400_v5  ;;  %v330_v5 = vsub.s32 5, %v1862_v19 }
  0x7a   :  { %1284 = vmatprep.subr.bf16.mxu0 %v1753_v3 }
  0x7b   :  { %1303 = vmatpush3.bf16.msra.mxu1 %v1408_v42 }
  0x7c   :  { %1304 = vmatprep.subr.bf16.mxu1 %v1753_v3 }
  0x7d   :  { %1285 = vmatpush3.bf16.msra.mxu0 %v1401_v6  ;;  %v331_v6 = vrot.slane %v1867_v21, %v330_v5 }
  0x7e   :  { %1286 = vmatprep.subr.bf16.mxu0 %v1753_v3 }
  0x7f   :  { %1305 = vmatpush3.bf16.msra.mxu1 %v1409_v43 }
  0x80   :  { %1306 = vmatprep.subr.bf16.mxu1 %v1753_v3 }
  0x81   :  { %1287 = vmatpush3.bf16.msra.mxu0 %v1402_v7 }
  0x82   :  { %1288 = vmatprep.subr.bf16.mxu0 %v1753_v3 }
  0x83   :  { %1307 = vmatpush3.bf16.msra.mxu1 %v1410_v44 }
  0x84   :  { %1308 = vmatprep.subr.bf16.mxu1 %v1753_v3 }
  0x85   :  { %1289 = vmatpush3.bf16.msra.mxu0 %v1403_v8 }
  0x86   :  { %1290 = vmatprep.subr.bf16.mxu0 %v1753_v3 }
  0x87   :  { %1309 = vmatpush3.bf16.msra.mxu1 %v1411_v45 }
  0x88   :  { %1310 = vmatprep.subr.bf16.mxu1 %v1753_v3 }
  0x89   :  { %1291 = vmatpush3.bf16.msra.mxu0 %v1404_v9 }
  0x8a   :  { %1292 = vmatprep.subr.bf16.mxu0 %v1753_v3 }
  0x8b   :  { %1311 = vmatpush3.bf16.msra.mxu1 %v1412_v46 }
  0x8c   :  { %1312 = vmatprep.subr.bf16.mxu1 %v1753_v3 }
  0x8d   :  { %1293 = vmatpush3.bf16.msra.mxu0 %v1405_v10 }
  0x8e   :  { %608 = vmatprep.subr.bf16.mxu0 %v1416_v2  ;;  %v1454_v2 = vld [vmem:[#allocation14 + $0x13c] ss:$12 sps:$4 sm:$0xff]  }
  0x8f   :  { %1313 = vmatpush3.bf16.msra.mxu1 %v1413_v47 }
  0x90   :  { %1318 = vmatprep.subr.bf16.mxu1 %v1753_v3 }
  0xf9   :  { %v156_v11 = vpop.xlane.xlu0 %155 }
  0xfa   :  { %v157_v12 = vmul.f32 0.041666668, %v156_v11 }
  0xfc   :  { %v162_v14 = vmul.f32 %v157_v12, %v157_v12  ;;  %v164_v23 = vsub.f32 %v154_v0, %v157_v12 }
  0xfd   :  { %v160_v13 = vpop.xlane.xlu0 %159 }
  0xfe   :  { %v161_v15 = vmul.f32 0.041666668, %v160_v13 }
 0x100   :  { %v163_v16 = vsub.f32 %v161_v15, %v162_v14  ;;  %v1420_v14 = vld [vmem:[#allocation14 + $0x94] ss:$12 sps:$4 sm:$0xff]   ;;  %v1418_v15 = vld [vmem:[#allocation14 + $0x90] ss:$12 sps:$4 sm:$0xff]  }
 0x102   :  { %v165_v17 = vadd.f32 1e-05, %v163_v16  ;;  %v1421_v16 = vld [vmem:[#allocation14 + $0x98] ss:$12 sps:$4 sm:$0xff]  }
 0x104   :  { %1486 = vrsqrt.f32 %v165_v17  ;;  %v1424_v17 = vld [vmem:[#allocation14 + $0x7c] ss:$12 sps:$4 sm:$0xff]  }
 0x111   :  { %v1487_v25 = vpop.eup %1486 }
 0x112   :  { %v167_v26 = vmul.f32 %v1487_v25, %v164_v23  ;;  %v1425_v23 = vld [vmem:[#allocation14 + $0x80] ss:$12 sps:$4 sm:$0xff]  }
 0x113   :  { %v1426_v25 = vld [vmem:[#allocation14 + $0x60] ss:$12 sps:$4 sm:$0xff]  }
 0x114   :  { %v172_v28 = vmul.f32 %v171_v24, %v167_v26  ;;  %v1428_v24 = vld [vmem:[#allocation14 + $0x64] ss:$12 sps:$4 sm:$0xff]   ;;  %v1429_v26 = vld [vmem:[#allocation14 + $0x68] ss:$12 sps:$4 sm:$0xff]  }
 0x116   :  { %v177_v29 = vadd.f32 %v176_v27, %v172_v28  ;;  %v1432_v27 = vld [vmem:[#allocation14 + $0x4c] ss:$12 sps:$4 sm:$0xff]   ;;  %v1430_v28 = vld [vmem:[#allocation14 + $0x48] ss:$12 sps:$4 sm:$0xff]  }
 0x118   :  { %v178_v30 = vpack.c.bf16 %v177_v29, %v177_v29  ;;  %v1433_v29 = vld [vmem:[#allocation14 + $0x50] ss:$12 sps:$4 sm:$0xff]  }
 0x11a   :  { %1295 = vmatmul.mubr.bf16.vlgmr.msra.gmra.mxu0 %v178_v30  ;;  %v1436_v30 = vld [vmem:[#allocation14 + $0x34] ss:$12 sps:$4 sm:$0xff]  }
 0x11b   :  { %609 = vmatpush1.bf16.msra.mxu0 %v1414_v1  ;;  %v1471_v1 = vld [vmem:[#allocation14 + $0x158] ss:$12 sps:$4 sm:$0xff]  }
 0x11c   :  { %610 = vmatprep.subr.bf16.mxu0 %v1420_v14  ;;  %v1475_v14 = vld [vmem:[#allocation14 + $0xf8] ss:$12 sps:$4 sm:$0xff]  }
 0x11f   :  { %611 = vmatpush1.bf16.msra.mxu0 %v1418_v15  ;;  %v1466_v15 = vld [vmem:[#allocation14 + $0xdc] ss:$12 sps:$4 sm:$0xff]  }
 0x120   :  { %612 = vmatprep.subr.bf16.mxu0 %v1424_v17  ;;  %v444_v17 = vld [vmem:[#allocation5] sm:$0xff] }
 0x123   :  { %613 = vmatpush1.bf16.msra.mxu0 %v1422_v18  ;;  %v445_v18 = vld [vmem:[#allocation7] sm:$0xff] }
 0x124   :  { %614 = vmatprep.subr.bf16.mxu0 %v1428_v24  ;;  %v1469_v24 = vld [vmem:[#allocation14 + $0xc4] ss:$12 sps:$4 sm:$0xff]  }
 0x127   :  { %615 = vmatpush1.bf16.msra.mxu0 %v1426_v25  ;;  %v1931_v25 = vmul.f32 %v445_v18, %v444_v17  ;;  %v1482_v17 = vld [vmem:[#allocation16 + $0x18] sm:$0xff]   ;;  %v1483_v18 = vld [vmem:[#allocation16 + $0x10] sm:$0xff]  }
 0x128   :  { %616 = vmatprep.subr.bf16.mxu0 %v1432_v27  ;;  %v1477_v27 = vld [vmem:[#allocation14 + $0xc8] ss:$12 sps:$4 sm:$0xff]  }
 0x12b   :  { %617 = vmatpush1.bf16.msra.mxu0 %v1430_v28  ;;  %v689_v28 = vpack.c.bf16 %v1931_v25, %v1931_v25 }
 0x12c   :  { %618 = vmatprep.subr.bf16.mxu0 %v1436_v30 }
 0x1da   :  { %v281_v33 = vpop.f32.mrf.mxu0 }
 0x1db   :  { %v282_v34 = vadd.f32 %v281_v33, %v198_v32  ;;  %v1755_v32 = vmov 0   ;;  %v1434_v33 = vld [vmem:[#allocation14 + $0x30] ss:$12 sps:$4 sm:$0xff]  }
 0x1dc   :  { %v1296_v35 = vpop.f32.mrf.mxu0  ;;  %640 = vmatprep.mubr.bf16.mxu0 %v1755_v32  ;;  %619 = vmatpush1.bf16.msra.mxu0 %v1434_v33 }
 0x1dd   :  { %v287_v36 = vmax.f32 %v282_v34, 0.0  ;;  %v1437_v34 = vld [vmem:[#allocation14 + $0x38] ss:$12 sps:$4 sm:$0xff]   ;;  %v1440_v35 = vld [vmem:[#allocation14 + $0x1c] ss:$12 sps:$4 sm:$0xff]  }
 0x1de   :  { %v284_v37 = vpop.f32.mrf.mxu0  ;;  %620 = vmatprep.subr.bf16.mxu0 %v1440_v35 }
 0x1df   :  { %288 = vadd.xlane.f32.xlu1 %v287_v36  ;;  %v291_v39 = vmul.f32 %v287_v36, %v287_v36  ;;  %v1441_v37 = vld [vmem:[#allocation14 + $0x20] ss:$12 sps:$4 sm:$0xff]  }
 0x1e0   :  { %v1297_v38 = vpop.f32.mrf.mxu0 }
 0x1e1   :  { %v1444_v38 = vld [vmem:[#allocation14 + $0x4] ss:$12 sps:$4 sm:$0xff]  }
 0x1e3   :  { %292 = vadd.xlane.f32.xlu1 %v291_v39  ;;  %v1442_v39 = vld [vmem:[#allocation14] ss:$12 sps:$4 sm:$0xff]  }
 0x268   :  { %v289_v48 = vpop.xlane.xlu1 %288 }
 0x269   :  { %v290_v49 = vmul.f32 0.03125, %v289_v48 }
 0x26b   :  { %v295_v51 = vmul.f32 %v290_v49, %v290_v49  ;;  %v297_v57 = vsub.f32 %v287_v36, %v290_v49  ;;  %v1438_v36 = vld [vmem:[#allocation14 + $0x18] ss:$12 sps:$4 sm:$0xff]   ;;  %v436_v49 = vsub.s32 6, %v1862_v19 }
 0x26c   :  { %v293_v50 = vpop.xlane.xlu1 %292  ;;  %621 = vmatpush1.bf16.msra.mxu0 %v1438_v36 }
 0x26d   :  { %v294_v52 = vmul.f32 0.03125, %v293_v50  ;;  %622 = vmatprep.subr.bf16.mxu0 %v1444_v38  ;;  %v441_v50 = vsub.s32 7, %v1862_v19 }
 0x26f   :  { %v296_v53 = vsub.f32 %v294_v52, %v295_v51  ;;  %v437_v52 = vrot.slane %v1867_v21, %v436_v49 }
 0x270   :  { %623 = vmatpush1.bf16.msra.mxu0 %v1442_v39  ;;  %v1940_v39 = vld [vmem:[#allocation10 + $0x8] sm:$0xff] }
 0x271   :  { %v298_v54 = vadd.f32 1e-05, %v296_v53  ;;  %851 = vmatprep.subr.bf16.mxu0 %v1448_v41 }
 0x273   :  { %1488 = vrsqrt.f32 %v298_v54 }
 0x280   :  { %v1489_v59 = vpop.eup %1488 }
 0x281   :  { %v300_v60 = vmul.f32 %v1489_v59, %v297_v57  ;;  %v442_v57 = vrot.slane %v1867_v21, %v441_v50  ;;  %v1452_v21 = vld [vmem:[#allocation14 + $0x138] ss:$12 sps:$4 sm:$0xff]  }
 0x283   :  { %v305_v62 = vmul.f32 %v304_v58, %v300_v60  ;;  %v1446_v60 = vld [vmem:[#allocation14 + $0x168] ss:$12 sps:$4 sm:$0xff]  }
 0x285   :  { %v310_v63 = vadd.f32 %v309_v61, %v305_v62  ;;  %v1470_v61 = vld [vmem:[#allocation14 + $0x170] ss:$12 sps:$4 sm:$0xff]  }
 0x287   :  { %v311_v0 = vpack.c.bf16 %v310_v63, %v310_v63  ;;  %v1451_v63 = vld [vmem:[#allocation14 + $0x154] ss:$12 sps:$4 sm:$0xff]  }
 0x289   :  { %1315 = vmatmul.mubr.bf16.vlgmr.msra.gmra.mxu1 %v311_v0  ;;  %v1449_v0 = vld [vmem:[#allocation14 + $0x150] ss:$12 sps:$4 sm:$0xff]  }
 0x28a   :  { %1334 = vmatprep.mubr.msk.bf16.mxu1 %vm1754_vm0, %v1753_v3  ;;  %1319 = vmatpush3.bf16.msra.mxu1 %v1417_v4  ;;  %v1472_v4 = vld [vmem:[#allocation14 + $0x140] ss:$12 sps:$4 sm:$0xff]  }
 0x28b   :  { %1320 = vmatprep.subr.bf16.mxu1 %v1753_v3 }
 0x28e   :  { %1321 = vmatpush3.bf16.msra.mxu1 %v1421_v16  ;;  %v1464_v16 = vld [vmem:[#allocation14 + $0xd8] ss:$12 sps:$4 sm:$0xff]  }
 0x28f   :  { %1322 = vmatprep.subr.bf16.mxu1 %v1753_v3 }
 0x292   :  { %1323 = vmatpush3.bf16.msra.mxu1 %v1425_v23  ;;  %v1476_v23 = vld [vmem:[#allocation14 + $0xe0] ss:$12 sps:$4 sm:$0xff]  }
 0x293   :  { %1324 = vmatprep.subr.bf16.mxu1 %v1753_v3 }
 0x296   :  { %1325 = vmatpush3.bf16.msra.mxu1 %v1429_v26  ;;  %v1467_v26 = vld [vmem:[#allocation14 + $0xc0] ss:$12 sps:$4 sm:$0xff]  }
 0x297   :  { %1326 = vmatprep.subr.bf16.mxu1 %v1753_v3 }
 0x29a   :  { %1327 = vmatpush3.bf16.msra.mxu1 %v1433_v29  ;;  %v1478_v29 = vld [vmem:[#allocation16 + $0x38] sm:$0xff]  }
 0x29b   :  { %1328 = vmatprep.subr.bf16.mxu1 %v1753_v3 }
 0x29e   :  { %1329 = vmatpush3.bf16.msra.mxu1 %v1437_v34 }
 0x29f   :  { %1330 = vmatprep.subr.bf16.mxu1 %v1753_v3 }
 0x2a2   :  { %1331 = vmatpush3.bf16.msra.mxu1 %v1441_v37 }
 0x2a3   :  { %1332 = vmatprep.subr.bf16.mxu1 %v1753_v3 }
 0x2a6   :  { %1333 = vmatpush3.bf16.msra.mxu1 %v1445_v40  ;;  %v935_v40 = vrot.slane %v1940_v39, %v1865_v20 }
 0x2a7   :  { %1338 = vmatprep.subr.bf16.mxu1 %v1753_v3 }
 0x349   :  { %v414_v7 = vpop.f32.mrf.mxu1 }
 0x34a   :  { %v415_v8 = vadd.f32 %v414_v7, %v331_v6  ;;  %v1457_v6 = vld [vmem:[#allocation14 + $0x124] ss:$12 sps:$4 sm:$0xff]   ;;  %v1455_v7 = vld [vmem:[#allocation14 + $0x120] ss:$12 sps:$4 sm:$0xff]  }
 0x34b   :  { %v1316_v9 = vpop.f32.mrf.mxu1 }
 0x34c   :  { %v1902_v10 = vmax.f32 %v415_v8, 0.0  ;;  %v1473_v8 = vld [vmem:[#allocation14 + $0x128] ss:$12 sps:$4 sm:$0xff]   ;;  %v1460_v9 = vld [vmem:[#allocation14 + $0x10c] ss:$12 sps:$4 sm:$0xff]  }
 0x34d   :  { %v417_v11 = vpop.f32.mrf.mxu1 }
 0x34e   :  { %421 = vadd.xlane.f32.xlu0 %v1902_v10  ;;  %v424_v12 = vmul.f32 %v1902_v10, %v1902_v10  ;;  %v1474_v11 = vld [vmem:[#allocation14 + $0x110] ss:$12 sps:$4 sm:$0xff]  }
 0x34f   :  { %v1317_v13 = vpop.f32.mrf.mxu1 }
 0x350   :  { %425 = vadd.xlane.f32.xlu1 %v424_v12  ;;  %v1463_v12 = vld [vmem:[#allocation14 + $0xf4] ss:$12 sps:$4 sm:$0xff]   ;;  %v1461_v13 = vld [vmem:[#allocation14 + $0xf0] ss:$12 sps:$4 sm:$0xff]  }
 0x3d7   :  { %v422_v42 = vpop.xlane.xlu0 %421 }
 0x3d8   :  { %v423_v43 = vmul.f32 0.03125, %v422_v42  ;;  %v952_v42 = vrot.slane %v1940_v39, %v175_v22 }
 0x3d9   :  { %v426_v44 = vpop.xlane.xlu1 %425 }
 0x3da   :  { %v428_v45 = vmul.f32 %v423_v43, %v423_v43  ;;  %v427_v46 = vmul.f32 0.03125, %v426_v44  ;;  %v430_v51 = vsub.f32 %v1902_v10, %v423_v43  ;;  %v1458_v10 = vld [vmem:[#allocation14 + $0x108] ss:$12 sps:$4 sm:$0xff]   ;;  %v941_v43 = vrot.slane %v1940_v39, %v303_v55 }
 0x3dc   :  { %v429_v47 = vsub.f32 %v427_v46, %v428_v45 }
 0x3de   :  { %v431_v48 = vadd.f32 1e-05, %v429_v47 }
 0x3e0   :  { %1490 = vrsqrt.f32 %v431_v48 }
 0x3ed   :  { %v1491_v53 = vpop.eup %1490 }
 0x3ee   :  { %v433_v54 = vmul.f32 %v1491_v53, %v430_v51 }
 0x3f0   :  { %v438_v58 = vmul.f32 %v437_v52, %v433_v54 }
 0x3f2   :  { %v443_v59 = vadd.f32 %v442_v57, %v438_v58 }
 0x3f4   :  { %v447_v62 = vpack.c.bf16 %v443_v59, %v443_v59  ;;  %v958_v59 = vrot.slane %v1940_v39, %v308_v56 }
 0x3f6   :  { %641 = vmatmul.mubr.bf16.vlgmr.msra.gmra.mxu0 %v447_v62  ;;  %1335 = vmatmul.mubr.bf16.vlgmr.msra.gmra.mxu1 %v447_v62 }
 0x3f7   :  { %852 = vmatpush1.bf16.msra.mxu0 %v1446_v60  ;;  %1339 = vmatpush3.bf16.msra.mxu1 %v1470_v61 }
 0x3f8   :  { %853 = vmatprep.subr.bf16.mxu0 %v1451_v63  ;;  %883 = vmatprep.mubr.bf16.mxu0 %v1755_v32 }
 0x3f9   :  { %1340 = vmatprep.subr.bf16.mxu1 %v1753_v3  ;;  %1354 = vmatprep.mubr.msk.bf16.mxu1 %vm1754_vm0, %v1753_v3 }
 0x3fb   :  { %854 = vmatpush1.bf16.msra.mxu0 %v1449_v0  ;;  %1341 = vmatpush3.bf16.msra.mxu1 %v1471_v1  ;;  %v974_v0 = vrot.slane %v1940_v39, %v330_v5 }
 0x3fc   :  { %855 = vmatprep.subr.bf16.mxu0 %v1454_v2  ;;  %1342 = vmatprep.subr.bf16.mxu1 %v1753_v3  ;;  %v969_v2 = vrot.slane %v1940_v39, %v197_v31  ;;  %v1479_v31 = vld [vmem:[#allocation16 + $0x30] sm:$0xff]  }
 0x3ff   :  { %856 = vmatpush1.bf16.msra.mxu0 %v1452_v21  ;;  %1343 = vmatpush3.bf16.msra.mxu1 %v1472_v4 }
 0x400   :  { %857 = vmatprep.subr.bf16.mxu0 %v1457_v6  ;;  %1344 = vmatprep.subr.bf16.mxu1 %v1753_v3 }
 0x403   :  { %858 = vmatpush1.bf16.msra.mxu0 %v1455_v7  ;;  %1345 = vmatpush3.bf16.msra.mxu1 %v1473_v8 }
 0x404   :  { %859 = vmatprep.subr.bf16.mxu0 %v1460_v9  ;;  %1346 = vmatprep.subr.bf16.mxu1 %v1753_v3 }
 0x407   :  { %860 = vmatpush1.bf16.msra.mxu0 %v1458_v10  ;;  %1347 = vmatpush3.bf16.msra.mxu1 %v1474_v11 }
 0x408   :  { %861 = vmatprep.subr.bf16.mxu0 %v1463_v12  ;;  %1348 = vmatprep.subr.bf16.mxu1 %v1753_v3 }
 0x40b   :  { %862 = vmatpush1.bf16.msra.mxu0 %v1461_v13  ;;  %1349 = vmatpush3.bf16.msra.mxu1 %v1475_v14 }
 0x40c   :  { %863 = vmatprep.subr.bf16.mxu0 %v1466_v15  ;;  %1350 = vmatprep.subr.bf16.mxu1 %v1753_v3  ;;  %v1480_v15 = vld [vmem:[#allocation16 + $0x28] sm:$0xff]  }
 0x40f   :  { %864 = vmatpush1.bf16.msra.mxu0 %v1464_v16  ;;  %1351 = vmatpush3.bf16.msra.mxu1 %v1476_v23  ;;  %v1481_v16 = vld [vmem:[#allocation16 + $0x20] sm:$0xff]   ;;  %v1484_v23 = vld [vmem:[#allocation16 + $0x8] sm:$0xff]  }
 0x410   :  { %865 = vmatprep.subr.bf16.mxu0 %v1469_v24  ;;  %1352 = vmatprep.subr.bf16.mxu1 %v1753_v3  ;;  %v1485_v24 = vld [vmem:[#allocation16] sm:$0xff]  }
 0x413   :  { %866 = vmatpush1.bf16.msra.mxu0 %v1467_v26  ;;  %1353 = vmatpush3.bf16.msra.mxu1 %v1477_v27 }
 0x414   :  { %1358 = vmatprep.subr.bf16.mxu0 %v1753_v3 }
 0x416   :  { %884 = vmatmul.mubr.bf16.vlgmr.msra.gmra.mxu0 %v689_v28  ;;  %1355 = vmatmul.mubr.bf16.vlgmr.msra.gmra.mxu1 %v689_v28 }
 0x417   :  { %1374 = vmatprep.mubr.msk.bf16.mxu0 %vm1754_vm0, %v1753_v3  ;;  %1359 = vmatpush3.bf16.msra.mxu0 %v1478_v29 }
 0x418   :  { %1360 = vmatprep.subr.bf16.mxu0 %v1753_v3 }
 0x41b   :  { %1361 = vmatpush3.bf16.msra.mxu0 %v1479_v31 }
 0x41c   :  { %1362 = vmatprep.subr.bf16.mxu0 %v1753_v3 }
 0x41f   :  { %1363 = vmatpush3.bf16.msra.mxu0 %v1480_v15 }
 0x420   :  { %1364 = vmatprep.subr.bf16.mxu0 %v1753_v3 }
 0x423   :  { %1365 = vmatpush3.bf16.msra.mxu0 %v1481_v16 }
 0x424   :  { %1366 = vmatprep.subr.bf16.mxu0 %v1753_v3 }
 0x427   :  { %1367 = vmatpush3.bf16.msra.mxu0 %v1482_v17 }
 0x428   :  { %1368 = vmatprep.subr.bf16.mxu0 %v1753_v3 }
 0x42b   :  { %1369 = vmatpush3.bf16.msra.mxu0 %v1483_v18 }
 0x42c   :  { %1370 = vmatprep.subr.bf16.mxu0 %v1753_v3 }
 0x42f   :  { %1371 = vmatpush3.bf16.msra.mxu0 %v1484_v23 }
 0x430   :  { %1372 = vmatprep.subr.bf16.mxu0 %v1753_v3 }
 0x433   :  { %1373 = vmatpush3.bf16.msra.mxu0 %v1485_v24 }
 0x4b6   :  { %v642_v30 = vpop.f32.mrf.mxu0  ;;  %v683_v32 = vpop.f32.mrf.mxu1 }
 0x4b7   :  { %v936_v41 = vadd.f32 %v935_v40, %v642_v30  ;;  %v970_v6 = vadd.f32 %v969_v2, %v683_v32 }
 0x4b8   :  { %v644_v33 = vpop.f32.mrf.mxu0  ;;  %v1336_v34 = vpop.f32.mrf.mxu1 }
 0x4b9   :  { %v953_v51 = vadd.f32 %v952_v42, %v644_v33  ;;  %v999_v34 = vrot.slane %v1940_v39, %v436_v49  ;;  %v153_v42 = vld [vmem:[#allocation10 + $0x10] sm:$0xff] }
 0x4ba   :  { %v646_v35 = vpop.f32.mrf.mxu0  ;;  %v686_v36 = vpop.f32.mrf.mxu1 }
 0x4bc   :  { %v647_v37 = vpop.f32.mrf.mxu0  ;;  %v1337_v38 = vpop.f32.mrf.mxu1 }
 0x4bd   :  { %v1004_v37 = vrot.slane %v1940_v39, %v441_v50 }
 0x4d6   :  { %v885_v44 = vpop.f32.mrf.mxu0  ;;  %v926_v45 = vpop.f32.mrf.mxu1 }
 0x4d7   :  { %v937_v46 = vadd.f32 %v936_v41, %v885_v44  ;;  %v975_v56 = vadd.f32 %v974_v0, %v926_v45  ;;  %v1115_v44 = vld [vmem:[#allocation8] sm:$0xff] }
 0x4d8   :  { %v887_v47 = vpop.f32.mrf.mxu0  ;;  %v1356_v48 = vpop.f32.mrf.mxu1  ;;  %vm1116_vm1 = vcmp.eq.f32.partialorder %v1115_v44, 0.0 }
 0x4d9   :  { %v942_v52 = vadd.f32 %v941_v43, %v937_v46  ;;  %v954_v58 = vadd.f32 %v953_v51, %v887_v47  ;;  %v1026_v43 = vrot.slane %v153_v42, %v1865_v20 }
 0x4da   :  { %v889_v53 = vpop.f32.mrf.mxu0  ;;  %v929_v54 = vpop.f32.mrf.mxu1 }
 0x4db   :  { %v1222_v57 = vmul.f32 -1.442695, %v942_v52  ;;  %v959_v61 = vadd.f32 %v958_v59, %v954_v58 }
 0x4dc   :  { %v890_v22 = vpop.f32.mrf.mxu0  ;;  %v1357_v60 = vpop.f32.mrf.mxu1 }
 0x4dd   :  { %1492 = vpow2.f32 %v1222_v57  ;;  %v1223_v55 = vmul.f32 -1.442695, %v959_v61 }
 0x4df   :  { %1494 = vpow2.f32 %v1223_v55 }
 0x4ea   :  { %v1493_v62 = vpop.eup %1492 }
 0x4eb   :  { %v946_v63 = vadd.f32 1.0, %v1493_v62 }
 0x4ec   :  { %v1495_v1 = vpop.eup %1494 }
 0x4ed   :  { %1496 = vrcp.f32 %v946_v63  ;;  %v963_v21 = vadd.f32 1.0, %v1495_v1 }
 0x4ef   :  { %1498 = vrcp.f32 %v963_v21 }
 0x4fa   :  { %v1497_v4 = vpop.eup %1496 }
 0x4fb   :  { %v976_v7 = vmul.f32 %v1497_v4, %v975_v56 }
 0x4fc   :  { %v1499_v9 = vpop.eup %1498 }
 0x4fd   :  { %v977_v8 = vadd.f32 %v976_v7, %v970_v6  ;;  %v979_v10 = vsub.f32 1.0, %v1499_v9  ;;  %v981_v13 = vmul.f32 %v1499_v9, %v1931_v25 }
 0x4ff   :  { %1500 = vtanh.f32 %v977_v8 }
 0x50c   :  { %v1501_v11 = vpop.eup %1500 }
 0x50d   :  { %v980_v12 = vmul.f32 %v1501_v11, %v979_v10 }
 0x50f   :  { %v982_v5 = vadd.f32 %v981_v13, %v980_v12 }
 0x511   :  { %983 = vadd.xlane.f32.xlu0 %v982_v5  ;;  %1124 = vst [vmem:[#allocation18] sm:$0xff] %v982_v5  ;;  %v986_v14 = vmul.f32 %v982_v5, %v982_v5 }
 0x513   :  { %987 = vadd.xlane.f32.xlu1 %v986_v14 }
 0x59a   :  { %v984_v25 = vpop.xlane.xlu0 %983 }
 0x59b   :  { %v985_v26 = vmul.f32 0.03125, %v984_v25 }
 0x59c   :  { %v988_v27 = vpop.xlane.xlu1 %987 }
 0x59d   :  { %v990_v28 = vmul.f32 %v985_v26, %v985_v26  ;;  %v989_v29 = vmul.f32 0.03125, %v988_v27  ;;  %v992_v33 = vsub.f32 %v982_v5, %v985_v26 }
 0x59f   :  { %v991_v30 = vsub.f32 %v989_v29, %v990_v28 }
 0x5a1   :  { %v993_v32 = vadd.f32 1e-05, %v991_v30 }
 0x5a3   :  { %1502 = vrsqrt.f32 %v993_v32 }
 0x5b0   :  { %v1503_v35 = vpop.eup %1502 }
 0x5b1   :  { %v995_v36 = vmul.f32 %v1503_v35, %v992_v33 }
 0x5b3   :  { %v1000_v38 = vmul.f32 %v999_v34, %v995_v36 }
 0x5b5   :  { %v1005_v40 = vadd.f32 %v1004_v37, %v1000_v38 }
 0x5b7   :  { %v1006_v41 = vpack.c.bf16 %v1005_v40, %v1005_v40 }
 0x5b9   :  { %1375 = vmatmul.mubr.bf16.vlgmr.msra.gmra.mxu0 %v1006_v41 }
 0x679   :  { %v1109_v45 = vpop.f32.mrf.mxu0 }
 0x67a   :  { %v1110_v46 = vadd.f32 %v1109_v45, %v1026_v43 }
 0x67b   :  { %v1376_v47 = vpop.f32.mrf.mxu0 }
 0x67c   :  { %v1117_v48 = vsel %vm1116_vm1, -1e+10, %v1110_v46 }
 0x67d   :  { %1118 = vmax.xlane.f32.xlu0 %v1117_v48  ;;  %v1112_v49 = vpop.f32.mrf.mxu0 }
 0x67f   :  { %v1377_v51 = vpop.f32.mrf.mxu0 }
 0x680   :  { %1695 = shalt.err (!%p1692_p7)
}
 0x681   :  { %1144 = dma.vmem_to_hbm [thread:$0]  %s1142_s8, 128, %s1990_s10, [#allocation19]  }
 0x682   :  { %s1757_s5 = smov [#allocation17]  }
 0x683   :  { %s1131_s18 = sshll.u32 %s1757_s5, 4  ;;  %s1132_s18 = int_to_ptr.vmem [resolvable:$true] %s1131_s18 }
 0x684   :  { %s1704_s19 = scalar_lea.vmem %s1132_s18, 128  ;;  %p1709_p9 = scmp.lt.s32.totalorder %s1132_s18, %s1132_s18 }
 0x685   :  { %p1705_p8 = scmp.ne.s32.totalorder %s1132_s18, %s1704_s19  ;;  %p1710_p10 = scmp.lt.s32.totalorder %s1704_s19, %s1704_s19 }
 0x687   :  { %p1711_p11 = por %p1710_p10, %p1709_p9 }
 0x689   :  { %p1712_p12 = pnand %p1711_p11, %p1705_p8 }
 0x706   :  { %v1119_v19 = vpop.xlane.xlu0 %1118 }
 0x707   :  { %vm1120_vm2 = vcmp.eq.f32.partialorder %v1117_v48, %v1119_v19 }
 0x708   :  { %v1232_v20 = vsel %vm1120_vm2, 1.0, %v1753_v3 }
 0x709   :  { %1123 = vst [vmem:[#allocation17] sm:$0xff] %v1232_v20 }
 0x70a   :  { %1715 = shalt.err (!%p1712_p12)
}
 0x70b   :  { %1134 = dma.vmem_to_hbm [thread:$0]  %s1132_s18, 128, %s1989_s9, [#allocation4]  }
 0x70c   :  { %1734 = dma.done.wait [#allocation4], 128  }
 0x70d   :  { %1735 = vsyncadd [#allocation4], 4294967168 }
 0x70e   :  { %1736 = dma.done.wait [#allocation19], 128  }
 0x70f   :  { %1737 = vsyncadd [#allocation19], 4294967168 }
 0x710   :  { %1151 = vsyncpa [#allocation3], 1 }
 0x711   :  { %1152 = vsyncpa [#allocation6], 1 }
 0x712   :  { %1153 = vsyncpa [#allocation9], 1 }
 0x713   :  { %1154 = vsyncpa [#allocation12], 1 }
 0x714   :  { %1155 = vsyncpa [#allocation15], 1 }
 0x715   :  { %1156 = vsyncpa [#allocation4], 1 }
 0x716   :  { %1157 = vsyncpa [#allocation19], 1 }

</bundles_post_ra>
